<compile_context>
chip_gen: v6e
topology: v6e:2x2x1
jax: 0.10.0
libtpu: 0.0.40
codegen_flags: <defaults>
</compile_context>

<pallas_src>
import math
from functools import partial

import jax
import jax.numpy as jnp
from jax.experimental import pallas as pl
from jax.experimental.pallas import tpu as pltpu


def _copy_kernel(x_ref, o_ref):
    # Identity copy of the current (tile_r, cols) tile.
    o_ref[...] = x_ref[...]


_MAX_ROW_TILE = 512  # 512 x 1024 f32 = 2 MiB per block (4 buffers -> 8 MiB peak)


def _choose_2d_layout(total):
    """Lane-dense (rows, cols) factorization of `total`.

    cols is a multiple of 128 (<= 1024); prefers rows >= 8 so every vreg
    sublane carries data.  Returns None if total is not a multiple of 128.
    """
    candidates = [c for c in (1024, 512, 256, 128) if total % c == 0]
    if not candidates:
        return None
    sublane_full = [c for c in candidates if total // c >= 8]
    cols = max(sublane_full) if sublane_full else max(candidates)
    return total // cols, cols


def _pallas_identity_copy(flat):
    """Identity copy of a flat 1-D buffer through VMEM, tiled lane-dense."""
    total = flat.shape[0]
    layout = _choose_2d_layout(total)

    if layout is None:
        # Fallback for totals that are not a multiple of 128: single
        # full-array block (block == full dims is always legal).
        x2d = jnp.reshape(flat, (1, total))
        y2d = pl.pallas_call(
            _copy_kernel,
            out_shape=jax.ShapeDtypeStruct(x2d.shape, x2d.dtype),
            grid=(1,),
            in_specs=[pl.BlockSpec(x2d.shape, lambda i: (0, 0))],
            out_specs=pl.BlockSpec(x2d.shape, lambda i: (0, 0)),
            input_output_aliases={0: 0},
        )(x2d)
        return jnp.reshape(y2d, (total,))

    rows, cols = layout
    x2d = jnp.reshape(flat, (rows, cols))

    # Full-dim block when rows is small; otherwise (8,128)-divisible tiles.
    tile_r = rows if rows <= _MAX_ROW_TILE else _MAX_ROW_TILE
    grid = (pl.cdiv(rows, tile_r),)

    y2d = pl.pallas_call(
        _copy_kernel,
        out_shape=jax.ShapeDtypeStruct((rows, cols), x2d.dtype),
        grid=grid,
        in_specs=[pl.BlockSpec((tile_r, cols), lambda i: (i, 0))],
        out_specs=pl.BlockSpec((tile_r, cols), lambda i: (i, 0)),
        input_output_aliases={0: 0},
        compiler_params=pltpu.CompilerParams(
            dimension_semantics=("parallel",),
        ),
    )(x2d)
    return jnp.reshape(y2d, (total,))


@partial(jax.jit, static_argnums=(1,))
def _view_forward(x, target):
    batch = x.shape[0]
    total = math.prod(x.shape)
    flat = jnp.reshape(x, (total,))          # metadata-only glue
    flat = _pallas_identity_copy(flat)       # hot path: tiled identity copy
    return jnp.reshape(flat, (batch,) + target)  # metadata-only glue


class View:
    """JAX/Pallas equivalent of torch `View(*shape)`."""

    def __init__(self, *shape):
        self.shape = shape

    def _resolve_shape(self, batch: int, numel: int):
        # Resolve a single -1 entry exactly like torch.Tensor.view does.
        shape = list(self.shape)
        per_batch = numel // batch
        if -1 in shape:
            if shape.count(-1) > 1:
                raise ValueError("only one dimension can be inferred (-1)")
            idx = shape.index(-1)
            known = math.prod(s for s in shape if s != -1)
            if known == 0 or per_batch % known != 0:
                raise ValueError(
                    f"View shape {tuple(self.shape)} incompatible with "
                    f"{per_batch} elements per batch"
                )
            shape[idx] = per_batch // known
        if math.prod(shape) != per_batch:
            raise ValueError(
                f"View shape {tuple(self.shape)} incompatible with "
                f"{per_batch} elements per batch"
            )
        return tuple(shape)

    def __call__(self, x: jax.Array) -> jax.Array:
        batch = x.shape[0]
        numel = math.prod(x.shape)
        target = self._resolve_shape(batch, numel)
        return _view_forward(x, target)


if __name__ == "__main__":
    key = jax.random.PRNGKey(0)
    # Small NCHW input consistent with an attention-module usage of View.
    x = jax.random.normal(key, (2, 4, 16, 16), dtype=jnp.float32)

    # View(4, 256): (2, 4, 16, 16) -> (2, 4, 256)
    view = View(4, 256)
    y = view(x)
    jax.block_until_ready(y)

    ref = jnp.reshape(x, (2, 4, 256))
    assert y.shape == (2, 4, 256)
    assert y.dtype == x.dtype
    assert bool(jnp.all(y == ref))

    # -1 inference path: View(-1) -> (2, 1024)
    y2 = View(-1)(x)
    jax.block_until_ready(y2)
    assert y2.shape == (2, 1024)
    assert bool(jnp.all(y2 == jnp.reshape(x, (2, 1024))))

    # Another -1 split: View(16, -1) -> (2, 16, 64)
    y3 = View(16, -1)(x)
    jax.block_until_ready(y3)
    assert y3.shape == (2, 16, 64)
    assert bool(jnp.all(y3 == jnp.reshape(x, (2, 16, 64))))

    print("KERNEL_OK")
</pallas_src>

<mosaic_0001>
module attributes {stable_mosaic.version = 11 : i64} {
  func.func @_copy_kernel(%arg0: i32, %arg1: memref<8x256xf32, #tpu.memory_space<vmem>>, %arg2: memref<8x256xf32, #tpu.memory_space<vmem>>) attributes {dimension_semantics = [#tpu.dimension_semantics<parallel>], iteration_bounds = array<i64: 1>, scalar_prefetch = 0 : i64, scratch_operands = 0 : i64, tpu.core_type = #tpu.core_type<tc>, window_params = [{transform_indices = @transform_0, window_bounds = array<i64: 8, 256>}, {transform_indices = @transform_1, window_bounds = array<i64: 8, 256>}]} {
    %c0 = arith.constant 0 : index
    %c0_0 = arith.constant 0 : index
    %0 = vector.load %arg1[%c0, %c0_0] : memref<8x256xf32, #tpu.memory_space<vmem>>, vector<8x256xf32>
    %c0_1 = arith.constant 0 : index
    %c0_2 = arith.constant 0 : index
    %1 = vector.load %arg2[%c0_1, %c0_2] : memref<8x256xf32, #tpu.memory_space<vmem>>, vector<8x256xf32>
    tpu.vector_store %arg2[%c0_1, %c0_2], %0 {strides = array<i32>} : memref<8x256xf32, #tpu.memory_space<vmem>>, vector<8x256xf32>,
    return
  }
  func.func @transform_0(%arg0: i32) -> (i32, i32) {
    %c0_i32 = arith.constant 0 : i32
    %c0_i32_0 = arith.constant 0 : i32
    return %arg0, %c0_i32 : i32, i32
  }
  func.func @transform_1(%arg0: i32) -> (i32, i32) {
    %c0_i32 = arith.constant 0 : i32
    %c0_i32_0 = arith.constant 0 : i32
    return %arg0, %c0_i32 : i32, i32
  }
}

</mosaic_0001>

<bundles_post_ra>
// kernel: _view_forward.1
= control target key start
LH: loop header
LB: loop body
LE: loop exit
PB: predicated region body
PF: predicated region fallthrough
CT: control target
= control target key end

     0   :  { %s38_s0 = inlined_call_operand.vmem [shape: f32[8,256], index: 0, kind: input, shape index: {}, may-alias: {0,1}]   ;;  %s39_s1 = inlined_call_operand.vmem [shape: f32[8,256], index: 1, kind: output, shape index: {}, may-alias: {0,1}]  }
   0x1   :  { %v8_v0 = vld [vmem:[%s38_s0] sm:$0xff]  ;;  %v9_v1 = vld [vmem:[%s38_s0 + $0x8] sm:$0xff] }
   0x2   :  { %10 = vst [vmem:[%s39_s1] sm:$0xff] %v8_v0  ;;  %11 = vst [vmem:[%s39_s1 + $0x8] sm:$0xff] %v9_v1 }

</bundles_post_ra>
